<compile_context>
chip_gen: v7x
topology: tpu7x:2x2x1
jax: 0.10.0
libtpu: 0.0.40
codegen_flags: <defaults>
</compile_context>

<pallas_src>
import jax
import jax.numpy as jnp
from jax.experimental import pallas as pl
from jax.experimental.pallas import tpu as pltpu


def grn_kernel(x_ref, gamma_ref, beta_ref, o_ref):
    # x_ref block: (Bt, T, C) — Bt fused batch elements per grid step.
    x = x_ref[...]                                             # native dtype
    xf = x.astype(jnp.float32)

    # L2 norm over the T axis (PyTorch dim=1), f32 accumulation -> (Bt, 1, C)
    gx = jnp.sqrt(jnp.sum(xf * xf, axis=1, keepdims=True))
    # Mean over the channel axis (PyTorch dim=-1) -> (Bt, 1, 1)
    gmean = jnp.mean(gx, axis=-1, keepdims=True)
    # Approximate reciprocal goes to the EUP slot (divide would use VALU).
    nx = gx * pl.reciprocal(gmean + 1e-6, approx=True)         # (Bt, 1, C)

    # gamma*(x*nx) + beta + x  ==  x * (1 + gamma*nx) + beta
    scale = 1.0 + gamma_ref[...].astype(jnp.float32) * nx      # (Bt, 1, C)
    beta = beta_ref[...].astype(jnp.float32)                   # (1, 1, C)

    if x.dtype == jnp.float32:
        y = xf * scale + beta
    else:
        # Low-precision inputs (e.g. bf16): keep the big (Bt, T, C) operand in
        # its native dtype for the apply; cast only the small per-channel
        # scale/beta. (v6e/v7x VPUs have bf16 ALUs.)
        y = x * scale.astype(x.dtype) + beta.astype(x.dtype)
    o_ref[...] = y.astype(o_ref.dtype)


def _choose_batch_tile(B, per_batch_bytes, target_block_bytes):
    """Largest divisor of B whose block stays under target_block_bytes,
    preferring to keep >= 2 grid steps (both v7x TensorCores busy)."""
    max_bt = max(1, target_block_bytes // max(1, per_batch_bytes))
    best = 1
    for d in range(1, B + 1):
        if B % d != 0 or d > max_bt:
            continue
        if B // d >= 2 or B == 1:
            best = d
    return best


def grn_forward(x, gamma, beta, *, target_block_bytes=2 * 1024 * 1024):
    """x: (B, T, C); gamma, beta: (1, 1, C)."""
    B, T, C = x.shape
    itemsize = x.dtype.itemsize
    per_batch_bytes = T * C * itemsize
    bt = _choose_batch_tile(B, per_batch_bytes, target_block_bytes)
    # TODO(synk): for very long sequences where even a single (1, T, C) slice
    # exceeds the VMEM budget, switch to a two-pass T-tiled structure
    # (accumulate sum(x*x) over T tiles with a (1,1,C) scratch, then a second
    # apply sweep). Not needed at these shapes.

    grid = (B // bt,)

    # Purely memory-bound: ~2 passes over x plus the tiny params.
    cost = pl.CostEstimate(
        flops=5 * B * T * C,
        transcendentals=B * C + B,                 # sqrt per (b, c), recip per b
        bytes_accessed=2 * B * T * C * itemsize + 2 * C * gamma.dtype.itemsize,
    )

    return pl.pallas_call(
        grn_kernel,
        out_shape=jax.ShapeDtypeStruct((B, T, C), x.dtype),
        grid_spec=pltpu.PrefetchScalarGridSpec(
            num_scalar_prefetch=0,
            grid=grid,
            in_specs=[
                pl.BlockSpec((bt, T, C), lambda b: (b, 0, 0)),
                pl.BlockSpec((1, 1, C), lambda b: (0, 0, 0)),
                pl.BlockSpec((1, 1, C), lambda b: (0, 0, 0)),
            ],
            out_specs=pl.BlockSpec((bt, T, C), lambda b: (b, 0, 0)),
        ),
        compiler_params=pltpu.CompilerParams(
            dimension_semantics=("parallel",),
            # Raise v5e's 16 MiB scoped default; stays within v7x's 64 MiB
            # physical. Blocks are capped at ~2 MiB so 2x(in)+2x(out) double
            # buffering plus f32 temporaries fits comfortably.
            vmem_limit_bytes=32 * 1024 * 1024,
        ),
        cost_estimate=cost,
    )(x, gamma, beta)


def grn_reference(x, gamma, beta):
    """Pure-JAX reference matching the PyTorch semantics exactly."""
    gx = jnp.linalg.norm(x, ord=2, axis=1, keepdims=True)       # (B, 1, C)
    nx = gx / (jnp.mean(gx, axis=-1, keepdims=True) + 1e-6)     # (B, 1, C)
    return gamma * (x * nx) + beta + x


def _check(B, T, C, key):
    kx, kg, kb = jax.random.split(key, 3)
    x = jax.random.normal(kx, (B, T, C), dtype=jnp.float32)
    # PyTorch init is zeros (identity layer); use small non-zero values so the
    # kernel math is actually exercised.
    gamma = 0.1 * jax.random.normal(kg, (1, 1, C), dtype=jnp.float32)
    beta = 0.1 * jax.random.normal(kb, (1, 1, C), dtype=jnp.float32)

    out = jax.block_until_ready(grn_forward(x, gamma, beta))
    ref = grn_reference(x, gamma, beta)
    err = jnp.max(jnp.abs(out - ref))
    # Tolerance slightly looser than pure f32 because the channel-mean
    # reciprocal uses the approximate EUP path (pl.reciprocal(approx=True)).
    assert jnp.allclose(out, ref, atol=2e-3, rtol=2e-3), f"max abs err {err}"


if __name__ == "__main__":
    key = jax.random.PRNGKey(0)
    k0, k1 = jax.random.split(key)
    # Small shape matching the module spec (grid of B steps, Bt=1).
    _check(B=2, T=8, C=32, key=k0)
    # Slightly larger, lane-dense shape that exercises the batch-fused path
    # (Bt=4, grid of 2 steps).
    _check(B=8, T=16, C=128, key=k1)
    print("KERNEL_OK")
</pallas_src>

<mosaic_0001>
module attributes {stable_mosaic.version = 11 : i64} {
  func.func @grn_kernel(%arg0: i32, %arg1: memref<1x8x32xf32, #tpu.memory_space<vmem>>, %arg2: memref<1x1x32xf32, #tpu.memory_space<vmem>>, %arg3: memref<1x1x32xf32, #tpu.memory_space<vmem>>, %arg4: memref<1x8x32xf32, #tpu.memory_space<vmem>>) attributes {dimension_semantics = [#tpu.dimension_semantics<parallel>], iteration_bounds = array<i64: 2>, scalar_prefetch = 0 : i64, scratch_operands = 0 : i64, tpu.core_type = #tpu.core_type<tc>, window_params = [{transform_indices = @transform_0, window_bounds = array<i64: 1, 8, 32>}, {pipeline_mode = #tpu.pipeline_mode<synchronous>, transform_indices = @transform_1, window_bounds = array<i64: 1, 1, 32>}, {pipeline_mode = #tpu.pipeline_mode<synchronous>, transform_indices = @transform_2, window_bounds = array<i64: 1, 1, 32>}, {transform_indices = @transform_3, window_bounds = array<i64: 1, 8, 32>}]} {
    %c0 = arith.constant 0 : index
    %c0_0 = arith.constant 0 : index
    %c0_1 = arith.constant 0 : index
    %0 = vector.load %arg1[%c0, %c0_0, %c0_1] : memref<1x8x32xf32, #tpu.memory_space<vmem>>, vector<1x8x32xf32>
    %1 = arith.mulf %0, %0 : vector<1x8x32xf32>
    %cst = arith.constant dense<0.000000e+00> : vector<1x32xf32>
    %2 = vector.multi_reduction <add>, %1, %cst [1] : vector<1x8x32xf32> to vector<1x32xf32>
    %3 = vector.shape_cast %2 : vector<1x32xf32> to vector<1x1x32xf32>
    %4 = math.sqrt %3 : vector<1x1x32xf32>
    %cst_2 = arith.constant dense<0.000000e+00> : vector<1x1xf32>
    %5 = vector.multi_reduction <add>, %4, %cst_2 [2] : vector<1x1x32xf32> to vector<1x1xf32>
    %6 = vector.shape_cast %5 : vector<1x1xf32> to vector<1x1x1xf32>
    %cst_3 = arith.constant 3.200000e+01 : f32
    %7 = vector.broadcast %cst_3 : f32 to vector<1x1x1xf32>
    %8 = arith.divf %6, %7 : vector<1x1x1xf32>
    %cst_4 = arith.constant 9.99999997E-7 : f32
    %9 = vector.broadcast %cst_4 : f32 to vector<1x1x1xf32>
    %10 = arith.addf %8, %9 : vector<1x1x1xf32>
    %11 = tpu.reciprocal %10 {approx = true} : vector<1x1x1xf32> -> vector<1x1x1xf32>
    %12 = vector.broadcast %11 : vector<1x1x1xf32> to vector<1x1x32xf32>
    %13 = arith.mulf %4, %12 : vector<1x1x32xf32>
    %c0_5 = arith.constant 0 : index
    %c0_6 = arith.constant 0 : index
    %c0_7 = arith.constant 0 : index
    %14 = vector.load %arg2[%c0_5, %c0_6, %c0_7] : memref<1x1x32xf32, #tpu.memory_space<vmem>>, vector<1x1x32xf32>
    %15 = arith.mulf %14, %13 : vector<1x1x32xf32>
    %cst_8 = arith.constant 1.000000e+00 : f32
    %16 = vector.broadcast %cst_8 : f32 to vector<1x1x32xf32>
    %17 = arith.addf %16, %15 : vector<1x1x32xf32>
    %c0_9 = arith.constant 0 : index
    %c0_10 = arith.constant 0 : index
    %c0_11 = arith.constant 0 : index
    %18 = vector.load %arg3[%c0_9, %c0_10, %c0_11] : memref<1x1x32xf32, #tpu.memory_space<vmem>>, vector<1x1x32xf32>
    %19 = vector.broadcast %17 : vector<1x1x32xf32> to vector<1x8x32xf32>
    %20 = arith.mulf %0, %19 : vector<1x8x32xf32>
    %21 = vector.broadcast %18 : vector<1x1x32xf32> to vector<1x8x32xf32>
    %22 = arith.addf %20, %21 : vector<1x8x32xf32>
    %c0_12 = arith.constant 0 : index
    %c0_13 = arith.constant 0 : index
    %c0_14 = arith.constant 0 : index
    %23 = vector.load %arg4[%c0_12, %c0_13, %c0_14] : memref<1x8x32xf32, #tpu.memory_space<vmem>>, vector<1x8x32xf32>
    tpu.vector_store %arg4[%c0_12, %c0_13, %c0_14], %22 {strides = array<i32>} : memref<1x8x32xf32, #tpu.memory_space<vmem>>, vector<1x8x32xf32>,
    return
  }
  func.func @transform_0(%arg0: i32) -> (i32, i32, i32) {
    %c0_i32 = arith.constant 0 : i32
    %c0_i32_0 = arith.constant 0 : i32
    %c0_i32_1 = arith.constant 0 : i32
    return %arg0, %c0_i32, %c0_i32_0 : i32, i32, i32
  }
  func.func @transform_1(%arg0: i32) -> (i32, i32, i32) {
    %c0_i32 = arith.constant 0 : i32
    %c0_i32_0 = arith.constant 0 : i32
    %c0_i32_1 = arith.constant 0 : i32
    %c0_i32_2 = arith.constant 0 : i32
    return %c0_i32, %c0_i32_0, %c0_i32_1 : i32, i32, i32
  }
  func.func @transform_2(%arg0: i32) -> (i32, i32, i32) {
    %c0_i32 = arith.constant 0 : i32
    %c0_i32_0 = arith.constant 0 : i32
    %c0_i32_1 = arith.constant 0 : i32
    %c0_i32_2 = arith.constant 0 : i32
    return %c0_i32, %c0_i32_0, %c0_i32_1 : i32, i32, i32
  }
  func.func @transform_3(%arg0: i32) -> (i32, i32, i32) {
    %c0_i32 = arith.constant 0 : i32
    %c0_i32_0 = arith.constant 0 : i32
    %c0_i32_1 = arith.constant 0 : i32
    return %arg0, %c0_i32, %c0_i32_0 : i32, i32, i32
  }
}

</mosaic_0001>

<bundles_post_ra>
// kernel: tpu_custom_call.1
= control target key start
LH: loop header
LB: loop body
LE: loop exit
PB: predicated region body
PF: predicated region fallthrough
CT: control target
= control target key end

     0   :  { %8 = vsyncpa [#allocation3], 0  ;;  %s671_s0 = inlined_call_operand.hbm [shape: f32[2,8,32], index: 0, kind: input, shape index: {}]   ;;  %s672_s1 = inlined_call_operand.vmem [shape: f32[1,1,32], index: 1, kind: input, shape index: {}]   ;;  %s673_s2 = inlined_call_operand.vmem [shape: f32[1,1,32], index: 2, kind: input, shape index: {}]   ;;  %s674_s3 = inlined_call_operand.hbm [shape: f32[2,8,32], index: 3, kind: output, shape index: {}]  }
   0x1   :  { %10 = vsyncpa [#allocation3 + $0x1], 0 }
   0x2   :  { %11 = vsyncpa [#allocation4], 0 }
   0x3   :  { %13 = vsyncpa [#allocation4 + $0x1], 0  ;;  %s497_s12 = smov 0   ;;  %s499_s13 = smov 0  }
   0x4   :  { %s501_s14 = smov 0   ;;  %s503_s15 = smov 0  }
   0x5 LB: > { %s518_s16 = sadd.s32 4294967295, %s473_s15   ;;  %s314_s17 = sadd.s32 4294967294, %s473_s15   ;;  %s473_s15 = sphi %s503_s15, %s689_s15   ;;  %s469_s14 = sphi %s501_s14, %s688_s14   ;;  %s465_s13 = sphi %s499_s13, %s687_s13   ;;  %s461_s12 = sphi %s497_s12, %s686_s12  }
   0x6   : > { %s522_s18 = sadd.s32 1, %s473_s15   ;;  %s26_s19 = sadd.s32 1, %s469_s14 }
   0x7   : > { %s23_s20 = ssub.s32 %s473_s15, %s522_s18  ;;  %p33_p0 = scmp.ne.s32.totalorder %s469_s14, %s465_s13 }
   0x8   : > { %p24_p1 = scmp.eq.s32.totalorder %s23_s20, 0  ;;  %p34_p2 = scmp.eq.s32.totalorder %s473_s15, 0 }
   0x9   : > { %p39_p3 = scmp.ne.s32.totalorder %s465_s13, %s461_s12  ;;  %p40_p4 = scmp.eq.s32.totalorder %s518_s16, 0 }
   0xa   : > { %s534_s21 = scalar_select %p24_p1, %s469_s14, %s26_s19  }
   0xb   : > { %p536_p5 = por %p34_p2, %p33_p0  ;;  %p540_p6 = por %p40_p4, %p39_p3 }
   0xc   : > { %p105_p7 = scmp.eq.s32.totalorder %s518_s16, 1  ;;  %p111_p8 = scmp.eq.s32.totalorder %s314_s17, 1 }
   0xd   : > { %p339_p10 = scmp.lt.s32.totalorder %s473_s15, 2  ;;  %s137_s26 = sand.u32 1, %s469_s14  }
   0xe   : > { %p547_p11 = por %p105_p7, %p33_p0  ;;  %p551_p12 = por %p111_p8, %p39_p3 }
   0xf   : > { %s318_s27 = sshll.u32 %s473_s15, 7  ;;  %s317_s28 = sshll.u32 %s137_s26, 3 }
  0x10   : > { %s678_s24 = scalar_select %p547_p11, 1, 0 }
  0x11   : > { %s679_s25 = scalar_select %p551_p12, 1, 0 }
  0x12   : > { %s560_s4 = scalar_lea.hbm %s671_s0, %s318_s27  ;;  %s141_s5 = scalar_lea.vmem [#allocation2], %s317_s28 }
  0x13   : > { %s148_s6 = sshll.u32 %s141_s5, 4  ;;  %p564_p13 = pnand %p339_p10, %p536_p5  ;;  %s568_s6 = int_to_ptr.vmem [resolvable:$true] %s148_s6 }
  0x14   : > { %s138_s8 = scalar_lea.sflag [#allocation3], %s137_s26  ;;  %s377_s9 = scalar_lea.hbm %s560_s4, 128 }
  0x15   : > { %p378_p2 = scmp.ne.s32.totalorder %s560_s4, %s377_s9  ;;  %p379_p3 = pneg %p564_p13 }
  0x16   : > { %s382_s17 = scalar_lea.hbm %s671_s0, 256  ;;  %p383_p5 = scmp.lt.u32.totalorder %s560_s4, %s671_s0 }
  0x17   : > { %p380_p4 = pnand %p379_p3, %p378_p2  ;;  %p384_p8 = scmp.lt.u32.totalorder %s382_s17, %s377_s9 }
  0x18   : > { %p386_p9 = scmp.lt.u32.totalorder %s377_s9, %s560_s4 }
  0x19   : > { %p381_p7 = pneg %p380_p4  ;;  %p385_p10 = por %p384_p8, %p383_p5 }
  0x1b   : > { %p387_p0 = por %p386_p9, %p385_p10 }
  0x1d   : > { %p388_p1 = pnand %p387_p0, %p381_p7 }
  0x1f   : > { %391 = shalt.err (!%p388_p1)
}
  0x20   : > { %s392_s22 = scalar_lea.vmem %s568_s6, 128  ;;  %s475_s26 = smov [#allocation2]  }
  0x21   : > { %p393_p2 = scmp.ne.s32.totalorder %s568_s6, %s392_s22  ;;  %s397_s27 = sshll.u32 %s475_s26, 4  ;;  %s398_s27 = int_to_ptr.vmem [resolvable:$false] %s397_s27 }
  0x22   : > { %s399_s28 = scalar_lea.vmem %s398_s27, 256  ;;  %p400_p11 = scmp.lt.s32.totalorder %s568_s6, %s398_s27 }
  0x23   : > { %p395_p4 = pnand %p393_p2, %p379_p3  ;;  %p401_p5 = scmp.lt.s32.totalorder %s399_s28, %s392_s22 }
  0x25   : > { %p396_p12 = pneg %p395_p4  ;;  %p402_p8 = por %p401_p5, %p400_p11 }
  0x27   : > { %p403_p9 = pnand %p402_p8, %p396_p12 }
  0x29   : > { %406 = shalt.err (!%p403_p9)
}
  0x2a   : > { %334 = dma.hbm_to_vmem [thread:$0]  (!%p564_p13), %s560_s4, 128, %s568_s6, %s138_s8  }
  0x2b   : > { %p681_p0 = scmp.lt.s32.totalorder %s473_s15, 3  ;;  %p682_p1 = scmp.ge.s32.totalorder %s473_s15, 1 }
  0x2d   : > { %p154_p3 = pnand %p682_p1, %p681_p0 }
  0x2e   : > { %s602_s29 = sand.u32 (!%p154_p3), 1, %s465_s13  }
  0x2f   : > { %157 = sbr.rel (%p154_p3) target bundleno = 270 (0x10e), region = 32  ;;  %s320_s30 = sshll.u32 (!%p154_p3), %s602_s29, 3 }
  0x30   : > { %s160_s5 = scalar_lea.sflag (!%p154_p3), [#allocation3], %s602_s29  ;;  %s163_s7 = scalar_lea.vmem (!%p154_p3), [#allocation2], %s320_s30 }
  0x36   : > { %452 = dma.done.wait (%p540_p6), %s160_s5, 128  }
  0x37   : > { %454 = vsyncadd (%p540_p6), %s160_s5, 4294967168  ;;  %v186_v0 = vld [vmem:[%s163_s7] sm:$0xff]  ;;  %vm188_vm0 = vcmask 261120   ;;  %v216_v18 = vlaneseq  ;;  %s324_s9 = sshll.u32 %s518_s16, 7  ;;  %s185_s10 = scalar_lea.vmem [#allocation5], %s320_s30 }
  0x38   : > { %v187_v1 = vmul.f32 %v186_v0, %v186_v0  ;;  %v211_v21 = vld [vmem:[%s672_s1] sm:$0x1]  ;;  %s244_s11 = sshll.u32 %s185_s10, 4  ;;  %s626_s20 = scalar_lea.hbm %s674_s3, %s324_s9  ;;  %s628_s11 = int_to_ptr.vmem [resolvable:$true] %s244_s11 }
  0x39   : > { %v217_v19 = vshrl.u32 %v216_v18, 7  ;;  %v322_v27 = vld [vmem:[%s673_s2] ss:$0 sm:$0xff]  ;;  %s231_s22 = scalar_lea.sflag [#allocation4], %s602_s29  ;;  %s407_s26 = scalar_lea.vmem %s628_s11, 128 }
  0x3a   : > { %v189_v2 = vsel %vm188_vm0, %v187_v1, 0.0  ;;  %p408_p6 = scmp.ne.s32.totalorder %s628_s11, %s407_s26  ;;  %p683_p11 = scmp.ne.s32.totalorder %s678_s24, 0 }
  0x3b   : > { %v190_v3 = vrot.slane %v189_v2, 4  ;;  %v218_v24 = vsub.s32 0, %v217_v19  ;;  %s476_s16 = smov [#allocation5]  }
  0x3c   : > { %p409_p12 = pnand %p408_p6, %p683_p11  ;;  %s411_s27 = sshll.u32 %s476_s16, 4  ;;  %s412_s27 = int_to_ptr.vmem [resolvable:$false] %s411_s27 }
  0x3d   : > { %v191_v4 = vadd.f32 %v190_v3, %v189_v2  ;;  %s413_s28 = scalar_lea.vmem %s412_s27, 256  ;;  %p414_p7 = scmp.lt.s32.totalorder %s628_s11, %s412_s27 }
  0x3e   : > { %p410_p13 = pneg %p409_p12  ;;  %p415_p10 = scmp.lt.s32.totalorder %s413_s28, %s407_s26 }
  0x3f   : > { %v192_v5 = vrot.slane %v191_v4, 2 }
  0x40   : > { %p416_p2 = por %p415_p10, %p414_p7 }
  0x41   : > { %v193_v6 = vadd.f32 %v192_v5, %v191_v4 }
  0x42   : > { %p417_p4 = pnand %p416_p2, %p410_p13 }
  0x43   : > { %v194_v7 = vrot.slane %v193_v6, 1 }
  0x45   : > { %v195_v8 = vadd.f32 %v194_v7, %v193_v6 }
  0x47   : > { %373 = vrsqrt.f32 %v195_v8  ;;  %vm198_vm1 = vcmp.eq.f32.partialorder %v195_v8, inf  ;;  %v201_v10 = vand.u32 2147483648, %v195_v8  ;;  %vm200_vm2 = vcmp.eq.f32.partialorder %v195_v8, 0.0 }
  0x51   : > { %v374_v9 = vpop.eup %373 }
  0x52   : > { %v197_v11 = vmul.f32 %v374_v9, %v195_v8 }
  0x54   : > { %v199_v12 = vsel %vm198_vm1, %v195_v8, %v197_v11 }
  0x55   : > { %v202_v13 = vsel %vm200_vm2, %v201_v10, %v199_v12 }
  0x56   : > { %v203_v14 = vsel %vm188_vm0, %v202_v13, 0.0 }
  0x57   : > { %204 = vadd.xlane.f32.xlu0 %v203_v14 }
  0xe4   : > { %v205_v15 = vpop.xlane.xlu0 %204 }
  0xe5   : > { %v207_v16 = vmul.f32 0.03125, %v205_v15 }
  0xe7   : > { %v208_v17 = vadd.f32 1e-06, %v207_v16 }
  0xe9   : > { %375 = vrcp.f32 %v208_v17 }
  0xf3   : > { %v376_v20 = vpop.eup %375 }
  0xf4   : > { %v210_v22 = vmul.f32 %v376_v20, %v202_v13 }
  0xf6   : > { %v212_v23 = vmul.f32 %v211_v21, %v210_v22 }
  0xf8   : > { %v213_v25 = vadd.f32 1.0, %v212_v23 }
  0xfa   : > { %v219_v26 = vrot.slane %v213_v25, %v218_v24 }
  0xfc   : > { %v221_v28 = vmul.f32 %v219_v26, %v186_v0 }
  0xfe   : > { %v228_v29 = vadd.f32 %v322_v27, %v221_v28 }
 0x100   : > { %229 = vst.msk [vmem:[%s185_s10] sm:$0xff] %vm188_vm0, %v228_v29 }
 0x101   : > { %420 = shalt.err (!%p417_p4)
}
 0x102   : > { %s421_s29 = scalar_lea.hbm %s626_s20, 128  ;;  %s425_s7 = scalar_lea.hbm %s674_s3, 256 }
 0x103   : > { %p422_p5 = scmp.ne.s32.totalorder %s626_s20, %s421_s29  ;;  %p426_p0 = scmp.lt.u32.totalorder %s626_s20, %s674_s3 }
 0x104   : > { %p427_p1 = scmp.lt.u32.totalorder %s425_s7, %s421_s29  ;;  %p429_p6 = scmp.lt.u32.totalorder %s421_s29, %s626_s20 }
 0x105   : > { %p423_p8 = pnand %p422_p5, %p683_p11 }
 0x106   : > { %p428_p3 = por %p427_p1, %p426_p0 }
 0x107   : > { %p424_p9 = pneg %p423_p8 }
 0x108   : > { %p430_p12 = por %p429_p6, %p428_p3 }
 0x10a   : > { %p431_p13 = pnand %p430_p12, %p424_p9 }
 0x10c   : > { %434 = shalt.err (!%p431_p13)
}
 0x10d   : > { %329 = dma.vmem_to_hbm [thread:$0]  (%p683_p11), %s628_s11, 128, %s626_s20, %s231_s22  }
 0x10e PF: > { %s256_s6 = sand.u32 1, %s461_s12   ;;  %p684_p7 = scmp.ne.s32.totalorder %s679_s25, 0 }
 0x10f   : > { %p685_p10 = scmp.ge.s32.totalorder %s473_s15, 2  ;;  %s257_s8 = scalar_lea.sflag [#allocation4], %s256_s6 }
 0x111   : > { %p336_p2 = pnand %p685_p10, %p684_p7 }
 0x113   : > { %456 = dma.done.wait (!%p336_p2), %s257_s8, 128  }
 0x114   : > { %458 = vsyncadd (!%p336_p2), %s257_s8, 4294967168  ;;  %p16_p4 = scmp.ge.s32.totalorder %s522_s18, 4   ;;  %s686_s12 = smov %s465_s13 }
 0x115   : > { %s687_s13 = smov %s469_s14  ;;  %s688_s14 = smov %s534_s21 }
 0x116   : > { %s689_s15 = smov %s522_s18  ;;  %18 = sbr.rel (!%p16_p4) target bundleno = 5 (0x5), region = 77 }
 0x11d   :  { %262 = vsyncpa [#allocation3], 1 }
 0x11e   :  { %264 = vsyncpa [#allocation3 + $0x1], 1 }
 0x11f   :  { %265 = vsyncpa [#allocation4], 1 }
 0x120   :  { %267 = vsyncpa [#allocation4 + $0x1], 1 }

</bundles_post_ra>
